<compile_context>
chip_gen: v5e
topology: v5e:2x2
jax: 0.10.0
libtpu: 0.0.40
codegen_flags: <defaults>
</compile_context>

<pallas_src>
import jax
import jax.numpy as jnp
from jax.experimental import pallas as pl
from jax.experimental.pallas import tpu as pltpu


def _linear_classifier_kernel(x_ref, w1_ref, b1_ref, w2_ref, b2_ref,
                              out_ref, logits_ref):
    # linear1: (TM, D_pad) @ (D_pad, H_pad) + (1, H_pad)   -- MXU, f32 acc
    x = x_ref[...]
    out = jnp.dot(x, w1_ref[...], preferred_element_type=jnp.float32) + b1_ref[...]
    # ReLU only feeds the logits path; `out` is returned pre-ReLU.
    out_f = jnp.maximum(out, 0.0)
    # linear2: (TM, H_pad) @ (H_pad, C_pad) + (1, C_pad)   -- MXU, f32 acc
    logits = jnp.dot(out_f.astype(w2_ref.dtype), w2_ref[...],
                     preferred_element_type=jnp.float32) + b2_ref[...]

    # Lane-dense (multiple-of-128 wide) unmasked stores.
    out_ref[...] = out.astype(out_ref.dtype)
    logits_ref[...] = logits.astype(logits_ref.dtype)


def _round_up(n, m):
    return ((n + m - 1) // m) * m


def linear_classifier_forward(x, w1, b1, w2, b2, *, tm=512):
    """x: (B, D_in); w1: (D_in, H); b1: (H,); w2: (H, C); b2: (C,).

    Returns (logits (B, C), out (B, H)) matching the PyTorch module.
    """
    B, D_in = x.shape
    H = w1.shape[1]
    C = w2.shape[1]
    dtype = x.dtype
    itemsize = jnp.dtype(dtype).itemsize

    # Lane-dense padded widths (multiples of 128); zero padding keeps math exact.
    D_pad = _round_up(D_in, 128)
    H_pad = _round_up(H, 128)
    C_pad = _round_up(C, 128)

    # Batch tile: 512 rows is the measured sweet spot for f32; never exceed
    # the (8-aligned) padded batch. All buffers stay far under VMEM budgets
    # (v7x 64 MiB physical included): double-buffered 512x128 f32 tiles.
    TM = min(tm, _round_up(B, 8))
    B_pad = pl.cdiv(B, TM) * TM

    # Zero-padded operands (padding columns/rows contribute nothing).
    x_p = jnp.zeros((B_pad, D_pad), dtype).at[:B, :D_in].set(x)
    w1_p = jnp.zeros((D_pad, H_pad), w1.dtype).at[:D_in, :H].set(w1)
    b1_p = jnp.zeros((1, H_pad), b1.dtype).at[0, :H].set(b1)
    w2_p = jnp.zeros((H_pad, C_pad), w2.dtype).at[:H, :C].set(w2)
    b2_p = jnp.zeros((1, C_pad), b2.dtype).at[0, :C].set(b2)

    grid = (B_pad // TM,)

    flops = 2 * B_pad * D_pad * H_pad + 2 * B_pad * H_pad * C_pad
    bytes_accessed = (
        B_pad * D_pad            # x in
        + D_pad * H_pad + H_pad  # w1, b1
        + H_pad * C_pad + C_pad  # w2, b2
        + B_pad * H_pad          # out
        + B_pad * C_pad          # logits
    ) * itemsize

    out_p, logits_p = pl.pallas_call(
        _linear_classifier_kernel,
        grid=grid,
        out_shape=(
            jax.ShapeDtypeStruct((B_pad, H_pad), dtype),
            jax.ShapeDtypeStruct((B_pad, C_pad), dtype),
        ),
        in_specs=[
            # x: tiled along batch, pipelined (double-buffered) across the grid.
            pl.BlockSpec((TM, D_pad), lambda i: (i, 0)),
            # Weights / biases: constant block index -> VMEM-resident, no re-DMA.
            pl.BlockSpec((D_pad, H_pad), lambda i: (0, 0)),
            pl.BlockSpec((1, H_pad), lambda i: (0, 0)),
            pl.BlockSpec((H_pad, C_pad), lambda i: (0, 0)),
            pl.BlockSpec((1, C_pad), lambda i: (0, 0)),
        ],
        out_specs=(
            pl.BlockSpec((TM, H_pad), lambda i: (i, 0)),
            pl.BlockSpec((TM, C_pad), lambda i: (i, 0)),
        ),
        compiler_params=pltpu.CompilerParams(
            dimension_semantics=("parallel",)),
        cost_estimate=pl.CostEstimate(
            flops=flops, transcendentals=0, bytes_accessed=bytes_accessed),
    )(x_p, w1_p, b1_p, w2_p, b2_p)

    logits = logits_p[:B, :C]
    out = out_p[:B, :H]
    return logits, out


def reference_forward(x, w1, b1, w2, b2):
    out = x @ w1 + b1
    out_f = jnp.maximum(out, 0.0)
    logits = out_f @ w2 + b2
    return logits, out


if __name__ == "__main__":
    # Small shapes consistent with the module: num_feat=32, n_modality=4,
    # n_classes=7  ->  D_in = 128, H = 32, C = 7.
    num_feat = 32
    n_modality = 4
    n_classes = 7
    D_in = num_feat * n_modality

    key = jax.random.PRNGKey(0)
    kx, kw1, kb1, kw2, kb2, kx2 = jax.random.split(key, 6)

    # PyTorch nn.Linear stores weight as (out_features, in_features);
    # initialize that way deterministically and transpose for x @ W layout.
    w1_pt = jax.random.normal(kw1, (num_feat, D_in), dtype=jnp.float32) * 0.05
    b1 = jax.random.normal(kb1, (num_feat,), dtype=jnp.float32) * 0.05
    w2_pt = jax.random.normal(kw2, (n_classes, num_feat), dtype=jnp.float32) * 0.05
    b2 = jax.random.normal(kb2, (n_classes,), dtype=jnp.float32) * 0.05
    w1 = w1_pt.T  # (D_in, H)
    w2 = w2_pt.T  # (H, C)

    # Case 1: small batch (single grid step).
    B = 8
    x = jax.random.normal(kx, (B, D_in), dtype=jnp.float32)
    logits, out = linear_classifier_forward(x, w1, b1, w2, b2)
    logits = jax.block_until_ready(logits)
    out = jax.block_until_ready(out)
    ref_logits, ref_out = reference_forward(x, w1, b1, w2, b2)
    assert logits.shape == (B, n_classes)
    assert out.shape == (B, num_feat)
    assert jnp.allclose(logits, ref_logits, atol=1e-5, rtol=1e-5)
    assert jnp.allclose(out, ref_out, atol=1e-5, rtol=1e-5)

    # Case 2: larger batch exercising the pipelined batch grid (grid > 1).
    B2 = 256
    x2 = jax.random.normal(kx2, (B2, D_in), dtype=jnp.float32)
    logits2, out2 = linear_classifier_forward(x2, w1, b1, w2, b2, tm=128)
    logits2 = jax.block_until_ready(logits2)
    out2 = jax.block_until_ready(out2)
    ref_logits2, ref_out2 = reference_forward(x2, w1, b1, w2, b2)
    assert logits2.shape == (B2, n_classes)
    assert out2.shape == (B2, num_feat)
    assert jnp.allclose(logits2, ref_logits2, atol=1e-5, rtol=1e-5)
    assert jnp.allclose(out2, ref_out2, atol=1e-5, rtol=1e-5)

    print("KERNEL_OK")
</pallas_src>

<mosaic_0001>
module attributes {stable_mosaic.version = 11 : i64} {
  func.func @_linear_classifier_kernel(%arg0: i32, %arg1: memref<8x128xf32, #tpu.memory_space<vmem>>, %arg2: memref<128x128xf32, #tpu.memory_space<vmem>>, %arg3: memref<1x128xf32, #tpu.memory_space<vmem>>, %arg4: memref<128x128xf32, #tpu.memory_space<vmem>>, %arg5: memref<1x128xf32, #tpu.memory_space<vmem>>, %arg6: memref<8x128xf32, #tpu.memory_space<vmem>>, %arg7: memref<8x128xf32, #tpu.memory_space<vmem>>) attributes {dimension_semantics = [#tpu.dimension_semantics<parallel>], iteration_bounds = array<i64: 1>, scalar_prefetch = 0 : i64, scratch_operands = 0 : i64, tpu.core_type = #tpu.core_type<tc>, window_params = [{transform_indices = @transform_0, window_bounds = array<i64: 8, 128>}, {pipeline_mode = #tpu.pipeline_mode<synchronous>, transform_indices = @transform_1, window_bounds = array<i64: 128, 128>}, {pipeline_mode = #tpu.pipeline_mode<synchronous>, transform_indices = @transform_2, window_bounds = array<i64: 1, 128>}, {pipeline_mode = #tpu.pipeline_mode<synchronous>, transform_indices = @transform_3, window_bounds = array<i64: 128, 128>}, {pipeline_mode = #tpu.pipeline_mode<synchronous>, transform_indices = @transform_4, window_bounds = array<i64: 1, 128>}, {transform_indices = @transform_5, window_bounds = array<i64: 8, 128>}, {transform_indices = @transform_6, window_bounds = array<i64: 8, 128>}]} {
    %c0 = arith.constant 0 : index
    %c0_0 = arith.constant 0 : index
    %0 = vector.load %arg1[%c0, %c0_0] : memref<8x128xf32, #tpu.memory_space<vmem>>, vector<8x128xf32>
    %c0_1 = arith.constant 0 : index
    %c0_2 = arith.constant 0 : index
    %1 = vector.load %arg2[%c0_1, %c0_2] : memref<128x128xf32, #tpu.memory_space<vmem>>, vector<128x128xf32>
    %cst = arith.constant dense<0.000000e+00> : vector<8x128xf32>
    %2 = tpu.matmul %0, %1, %cst {dimension_numbers = #tpu.dot_dimension_numbers<[1], [0], [0], [1], [0, 0, 1, 1], [], []>} : vector<8x128xf32>, vector<128x128xf32>, vector<8x128xf32> -> vector<8x128xf32>
    %c0_3 = arith.constant 0 : index
    %c0_4 = arith.constant 0 : index
    %3 = vector.load %arg3[%c0_3, %c0_4] : memref<1x128xf32, #tpu.memory_space<vmem>>, vector<1x128xf32>
    %4 = vector.broadcast %3 : vector<1x128xf32> to vector<8x128xf32>
    %5 = arith.addf %2, %4 : vector<8x128xf32>
    %cst_5 = arith.constant 0.000000e+00 : f32
    %6 = vector.broadcast %cst_5 : f32 to vector<8x128xf32>
    %7 = arith.maximumf %5, %6 : vector<8x128xf32>
    %c0_6 = arith.constant 0 : index
    %c0_7 = arith.constant 0 : index
    %8 = vector.load %arg4[%c0_6, %c0_7] : memref<128x128xf32, #tpu.memory_space<vmem>>, vector<128x128xf32>
    %cst_8 = arith.constant dense<0.000000e+00> : vector<8x128xf32>
    %9 = tpu.matmul %7, %8, %cst_8 {dimension_numbers = #tpu.dot_dimension_numbers<[1], [0], [0], [1], [0, 0, 1, 1], [], []>} : vector<8x128xf32>, vector<128x128xf32>, vector<8x128xf32> -> vector<8x128xf32>
    %c0_9 = arith.constant 0 : index
    %c0_10 = arith.constant 0 : index
    %10 = vector.load %arg5[%c0_9, %c0_10] : memref<1x128xf32, #tpu.memory_space<vmem>>, vector<1x128xf32>
    %11 = vector.broadcast %10 : vector<1x128xf32> to vector<8x128xf32>
    %12 = arith.addf %9, %11 : vector<8x128xf32>
    %c0_11 = arith.constant 0 : index
    %c0_12 = arith.constant 0 : index
    %13 = vector.load %arg6[%c0_11, %c0_12] : memref<8x128xf32, #tpu.memory_space<vmem>>, vector<8x128xf32>
    tpu.vector_store %arg6[%c0_11, %c0_12], %5 {strides = array<i32>} : memref<8x128xf32, #tpu.memory_space<vmem>>, vector<8x128xf32>,
    %c0_13 = arith.constant 0 : index
    %c0_14 = arith.constant 0 : index
    %14 = vector.load %arg7[%c0_13, %c0_14] : memref<8x128xf32, #tpu.memory_space<vmem>>, vector<8x128xf32>
    tpu.vector_store %arg7[%c0_13, %c0_14], %12 {strides = array<i32>} : memref<8x128xf32, #tpu.memory_space<vmem>>, vector<8x128xf32>,
    return
  }
  func.func @transform_0(%arg0: i32) -> (i32, i32) {
    %c0_i32 = arith.constant 0 : i32
    %c0_i32_0 = arith.constant 0 : i32
    return %arg0, %c0_i32 : i32, i32
  }
  func.func @transform_1(%arg0: i32) -> (i32, i32) {
    %c0_i32 = arith.constant 0 : i32
    %c0_i32_0 = arith.constant 0 : i32
    %c0_i32_1 = arith.constant 0 : i32
    return %c0_i32, %c0_i32_0 : i32, i32
  }
  func.func @transform_2(%arg0: i32) -> (i32, i32) {
    %c0_i32 = arith.constant 0 : i32
    %c0_i32_0 = arith.constant 0 : i32
    %c0_i32_1 = arith.constant 0 : i32
    return %c0_i32, %c0_i32_0 : i32, i32
  }
  func.func @transform_3(%arg0: i32) -> (i32, i32) {
    %c0_i32 = arith.constant 0 : i32
    %c0_i32_0 = arith.constant 0 : i32
    %c0_i32_1 = arith.constant 0 : i32
    return %c0_i32, %c0_i32_0 : i32, i32
  }
  func.func @transform_4(%arg0: i32) -> (i32, i32) {
    %c0_i32 = arith.constant 0 : i32
    %c0_i32_0 = arith.constant 0 : i32
    %c0_i32_1 = arith.constant 0 : i32
    return %c0_i32, %c0_i32_0 : i32, i32
  }
  func.func @transform_5(%arg0: i32) -> (i32, i32) {
    %c0_i32 = arith.constant 0 : i32
    %c0_i32_0 = arith.constant 0 : i32
    return %arg0, %c0_i32 : i32, i32
  }
  func.func @transform_6(%arg0: i32) -> (i32, i32) {
    %c0_i32 = arith.constant 0 : i32
    %c0_i32_0 = arith.constant 0 : i32
    return %arg0, %c0_i32 : i32, i32
  }
}

</mosaic_0001>

<bundles_post_ra>
// kernel: tpu_custom_call.1
= control target key start
LH: loop header
LB: loop body
LE: loop exit
PB: predicated region body
PF: predicated region fallthrough
CT: control target
= control target key end

     0   :  { %12 = vsyncpa [#allocation3], 0  ;;  %s387_s0 = inlined_call_operand.hbm [shape: f32[8,128], index: 0, kind: input, shape index: {}]   ;;  %s388_s1 = inlined_call_operand.hbm [shape: f32[128,128], index: 1, kind: input, shape index: {}]   ;;  %s389_s2 = inlined_call_operand.vmem [shape: f32[1,128], index: 2, kind: input, shape index: {}]   ;;  %s390_s3 = inlined_call_operand.hbm [shape: f32[128,128], index: 3, kind: input, shape index: {}]   ;;  %s391_s4 = inlined_call_operand.vmem [shape: f32[1,128], index: 4, kind: input, shape index: {}]   ;;  %s392_s5 = inlined_call_operand.hbm [shape: f32[8,128], index: 5, kind: output, shape index: {0}]   ;;  %s393_s6 = inlined_call_operand.hbm [shape: f32[8,128], index: 6, kind: output, shape index: {1}]  }
   0x1   :  { %13 = vsyncpa [#allocation6], 0 }
   0x2   :  { %14 = vsyncpa [#allocation4], 0  ;;  %s31_s23 = sshll.u32 %s388_s1, 4  ;;  %s32_s23 = int_to_ptr.hbm [resolvable:$true] %s31_s23 }
   0x3   :  { %15 = vsyncpa [#allocation10], 0  ;;  %s324_s24 = smov [#allocation5]   ;;  %s21_s28 = sshll.u32 %s387_s0, 4  ;;  %s22_s28 = int_to_ptr.hbm [resolvable:$true] %s21_s28 }
   0x4   :  { %s33_s25 = sshll.u32 %s324_s24, 4  ;;  %s325_s29 = smov 128   ;;  %s34_s25 = int_to_ptr.vmem [resolvable:$true] %s33_s25 }
   0x5   :  { %s326_s30 = smov 8   ;;  %s327_s7 = smov [#allocation2]  }
   0x6   :  { %39 = dma.hbm_to_vmem [thread:$0]  %s32_s23, 2048, %s34_s25, [#allocation6], %s325_s29, %s325_s29, %s326_s30  }
   0x7   :  { %s23_s8 = sshll.u32 %s327_s7, 4  ;;  %s46_s11 = sshll.u32 %s390_s3, 4  ;;  %s24_s8 = int_to_ptr.vmem [resolvable:$true] %s23_s8  ;;  %s47_s11 = int_to_ptr.hbm [resolvable:$true] %s46_s11 }
   0x8   :  { %26 = dma.hbm_to_vmem [thread:$0]  %s22_s28, 128, %s24_s8, [#allocation3]  }
   0x9   :  { %s328_s1 = smov [#allocation7]  }
   0xa   :  { %s48_s12 = sshll.u32 %s328_s1, 4  ;;  %s49_s12 = int_to_ptr.vmem [resolvable:$true] %s48_s12 }
   0xb   :  { %54 = dma.hbm_to_vmem [thread:$0]  %s47_s11, 2048, %s49_s12, [#allocation6], %s325_s29, %s325_s29, %s326_s30  }
   0xc   :  { %316 = dma.done.wait [#allocation3], 128  }
   0xd   :  { %317 = vsyncadd [#allocation3], 4294967168 }
   0xe   :  { %318 = dma.done.wait [#allocation6], 4096  }
   0xf   :  { %319 = vsyncadd [#allocation6], 4294963200  ;;  %v85_v0 = vld [vmem:[#allocation5 + $0x78] sm:$0xff]  ;;  %v84_v1 = vld [vmem:[#allocation5 + $0x70] sm:$0xff]  ;;  %s329_s13 = smov [#allocation8]   ;;  %s160_s17 = sshll.u32 %s392_s5, 4  ;;  %s161_s17 = int_to_ptr.hbm [resolvable:$true] %s160_s17 }
  0x10   :  { %90 = vmatpush.msra.mxu0 %v85_v0  ;;  %v83_v2 = vld [vmem:[#allocation5 + $0x68] sm:$0xff]  ;;  %v82_v3 = vld [vmem:[#allocation5 + $0x60] sm:$0xff]  ;;  %v126_v4 = vld [vmem:[#allocation7 + $0x78] sm:$0xff]  ;;  %s158_s14 = sshll.u32 %s329_s13, 4  ;;  %s330_s20 = smov [#allocation9]   ;;  %s159_s14 = int_to_ptr.vmem [resolvable:$true] %s158_s14 }
  0x11   :  { %v81_v5 = vld [vmem:[#allocation5 + $0x58] sm:$0xff]  ;;  %131 = vmatpush.msra.mxu1 %v126_v4  ;;  %v125_v6 = vld [vmem:[#allocation7 + $0x70] sm:$0xff]  ;;  %v124_v7 = vld [vmem:[#allocation7 + $0x68] sm:$0xff]  ;;  %s171_s23 = sshll.u32 %s393_s6, 4  ;;  %s172_s23 = int_to_ptr.hbm [resolvable:$true] %s171_s23 }
  0x12   :  { %91 = vmatpush.msra.mxu0 %v84_v1  ;;  %v80_v8 = vld [vmem:[#allocation5 + $0x50] sm:$0xff]  ;;  %v123_v9 = vld [vmem:[#allocation7 + $0x60] sm:$0xff]  ;;  %v79_v10 = vld [vmem:[#allocation5 + $0x48] sm:$0xff] }
  0x13   :  { %132 = vmatpush.msra.mxu1 %v125_v6  ;;  %v122_v11 = vld [vmem:[#allocation7 + $0x58] sm:$0xff]  ;;  %v78_v12 = vld [vmem:[#allocation5 + $0x40] sm:$0xff]  ;;  %v121_v13 = vld [vmem:[#allocation7 + $0x50] sm:$0xff] }
  0x14   :  { %92 = vmatpush.msra.mxu0 %v83_v2  ;;  %v77_v14 = vld [vmem:[#allocation5 + $0x38] sm:$0xff]  ;;  %v120_v15 = vld [vmem:[#allocation7 + $0x48] sm:$0xff]  ;;  %v76_v16 = vld [vmem:[#allocation5 + $0x30] sm:$0xff] }
  0x15   :  { %133 = vmatpush.msra.mxu1 %v124_v7  ;;  %v119_v17 = vld [vmem:[#allocation7 + $0x40] sm:$0xff]  ;;  %v75_v18 = vld [vmem:[#allocation5 + $0x28] sm:$0xff]  ;;  %v118_v19 = vld [vmem:[#allocation7 + $0x38] sm:$0xff] }
  0x16   :  { %93 = vmatpush.msra.mxu0 %v82_v3  ;;  %v74_v20 = vld [vmem:[#allocation5 + $0x20] sm:$0xff]  ;;  %v117_v21 = vld [vmem:[#allocation7 + $0x30] sm:$0xff]  ;;  %v73_v22 = vld [vmem:[#allocation5 + $0x18] sm:$0xff] }
  0x17   :  { %134 = vmatpush.msra.mxu1 %v123_v9  ;;  %v116_v23 = vld [vmem:[#allocation7 + $0x28] sm:$0xff]  ;;  %v72_v24 = vld [vmem:[#allocation5 + $0x10] sm:$0xff]  ;;  %v115_v25 = vld [vmem:[#allocation7 + $0x20] sm:$0xff] }
  0x18   :  { %94 = vmatpush.msra.mxu0 %v81_v5  ;;  %v71_v26 = vld [vmem:[#allocation5 + $0x8] sm:$0xff]  ;;  %v114_v27 = vld [vmem:[#allocation7 + $0x18] sm:$0xff]  ;;  %v70_v28 = vld [vmem:[#allocation5] sm:$0xff] }
  0x19   :  { %135 = vmatpush.msra.mxu1 %v122_v11  ;;  %v69_v29 = vld [vmem:[#allocation2] sm:$0xff]  ;;  %v113_v30 = vld [vmem:[#allocation7 + $0x10] sm:$0xff]  ;;  %v112_v31 = vld [vmem:[#allocation7 + $0x8] sm:$0xff] }
  0x1a   :  { %95 = vmatpush.msra.mxu0 %v80_v8  ;;  %v111_v32 = vld [vmem:[#allocation7] sm:$0xff]  ;;  %v194_v33 = vld [vmem:[%s389_s2] ss:$0 sm:$0xff]  ;;  %s169_s2 = sshll.u32 %s330_s20, 4  ;;  %s170_s2 = int_to_ptr.vmem [resolvable:$true] %s169_s2 }
  0x1b   :  { %136 = vmatpush.msra.mxu1 %v121_v13  ;;  %v195_v37 = vld [vmem:[%s391_s4] ss:$0 sm:$0xff] }
  0x1c   :  { %96 = vmatpush.msra.mxu0 %v79_v10 }
  0x1d   :  { %137 = vmatpush.msra.mxu1 %v120_v15 }
  0x1e   :  { %97 = vmatpush.msra.mxu0 %v78_v12 }
  0x1f   :  { %138 = vmatpush.msra.mxu1 %v119_v17 }
  0x20   :  { %98 = vmatpush.msra.mxu0 %v77_v14 }
  0x21   :  { %139 = vmatpush.msra.mxu1 %v118_v19 }
  0x22   :  { %99 = vmatpush.msra.mxu0 %v76_v16 }
  0x23   :  { %140 = vmatpush.msra.mxu1 %v117_v21 }
  0x24   :  { %100 = vmatpush.msra.mxu0 %v75_v18 }
  0x25   :  { %141 = vmatpush.msra.mxu1 %v116_v23 }
  0x26   :  { %101 = vmatpush.msra.mxu0 %v74_v20 }
  0x27   :  { %142 = vmatpush.msra.mxu1 %v115_v25 }
  0x28   :  { %102 = vmatpush.msra.mxu0 %v73_v22 }
  0x29   :  { %143 = vmatpush.msra.mxu1 %v114_v27 }
  0x2a   :  { %103 = vmatpush.msra.mxu0 %v72_v24 }
  0x2b   :  { %144 = vmatpush.msra.mxu1 %v113_v30 }
  0x2c   :  { %104 = vmatpush.msra.mxu0 %v71_v26 }
  0x2d   :  { %145 = vmatpush.msra.mxu1 %v112_v31 }
  0x2e   :  { %105 = vmatpush.msra.mxu0 %v70_v28 }
  0x2f   :  { %106 = vmatmul.f32.vlgmr.msra.gmra.mxu0 %v69_v29  ;;  %146 = vmatpush.msra.mxu1 %v111_v32 }
  0xac   :  { %v107_v34 = vpop.f32.mrf.mxu0 }
  0xad   :  { %v108_v35 = vadd.f32 %v194_v33, %v107_v34 }
  0xaf   :  { %151 = vst [vmem:[#allocation8] sm:$0xff] %v108_v35  ;;  %v110_v36 = vmax.f32 %v108_v35, 0.0 }
  0xb0   :  { %163 = dma.vmem_to_hbm [thread:$0]  %s159_s14, 128, %s161_s17, [#allocation4]  }
  0xb1   :  { %147 = vmatmul.f32.vlgmr.msra.gmra.mxu1 %v110_v36 }
 0x12e   :  { %v148_v38 = vpop.f32.mrf.mxu1 }
 0x12f   :  { %v149_v39 = vadd.f32 %v195_v37, %v148_v38 }
 0x131   :  { %152 = vst [vmem:[#allocation9] sm:$0xff] %v149_v39 }
 0x132   :  { %174 = dma.vmem_to_hbm [thread:$0]  %s170_s2, 128, %s172_s23, [#allocation10]  }
 0x133   :  { %320 = dma.done.wait [#allocation4], 128  }
 0x134   :  { %321 = vsyncadd [#allocation4], 4294967168 }
 0x135   :  { %322 = dma.done.wait [#allocation10], 128  }
 0x136   :  { %323 = vsyncadd [#allocation10], 4294967168 }
 0x137   :  { %183 = vsyncpa [#allocation3], 1 }
 0x138   :  { %184 = vsyncpa [#allocation6], 1 }
 0x139   :  { %185 = vsyncpa [#allocation4], 1 }
 0x13a   :  { %186 = vsyncpa [#allocation10], 1 }

</bundles_post_ra>
